<compile_context>
chip_gen: v7x
topology: tpu7x:2x2x1
jax: 0.10.0
libtpu: 0.0.40
codegen_flags: <defaults>
</compile_context>

<pallas_src>
import math

import jax
import jax.numpy as jnp
from jax.experimental import pallas as pl
from jax.experimental.pallas import tpu as pltpu

BN_EPS = 1e-5


def _fused_bn_conv1x1_kernel(x_ref, w_ref, b_ref, o_ref):
    # x_ref: (tile, D) token tile            w_ref: (C, D) BN-folded conv weight
    # b_ref: (C, 1) folded bias (f32)        o_ref: (C, tile) lane-dense output
    # Attention-style contraction on the last dim of BOTH operands (W @ X^T), the
    # same pattern as Q @ K^T: the MXU consumes x via the transposed push path, no
    # XLU transpose of the large x tile is materialized.
    y = jax.lax.dot_general(
        w_ref[...], x_ref[...],
        dimension_numbers=(((1,), (1,)), ((), ())),
        preferred_element_type=jnp.float32,
    )
    o_ref[...] = (y + b_ref[...]).astype(o_ref.dtype)


def _fold_bn_into_conv(gamma, beta, mean, var, w_cd, eps=BN_EPS):
    """Fold eval-mode BatchNorm into the 1x1 conv (all in f32).

    y = ((x - mean) * gamma * rsqrt(var+eps) + beta) @ w^T
      = x @ (w * scale)^T + w @ (beta - mean * scale)
    """
    scale = gamma * jax.lax.rsqrt(var + eps)              # (D,)
    w_fold = w_cd * scale[None, :]                        # (C, D)
    bias = w_cd @ (beta - mean * scale)                   # (C,)
    return w_fold, bias.reshape(-1, 1)                    # (C, D), (C, 1)


def _round_up(x, m):
    return ((x + m - 1) // m) * m


def _nearest_upsample_nchw(x, out_hw):
    """Nearest upsample of NCHW to (out_hw, out_hw), matching PyTorch 'nearest'."""
    b, c, h, w = x.shape
    if out_hw == h and out_hw == w:
        return x
    if out_hw % h == 0 and out_hw % w == 0:
        # Integral factor: broadcast+reshape repeat (single fused copy, no gathers).
        fh, fw = out_hw // h, out_hw // w
        x = jnp.broadcast_to(x[:, :, :, None, :, None], (b, c, h, fh, w, fw))
        return x.reshape(b, c, out_hw, out_hw)
    # General case: src_idx = floor(dst_idx * in_size / out_size)
    ri = (jnp.arange(out_hw) * h) // out_hw
    ci = (jnp.arange(out_hw) * w) // out_hw
    return x[:, :, ri, :][:, :, :, ci]


def vit2cnn_projector(embed, params, out_hw, *, tile_l=None,
                      compute_dtype=jnp.bfloat16):
    """embed: (B, L, D). Returns NCHW (B, C, out_hw, out_hw) in embed.dtype.

    compute_dtype: storage dtype for x and the folded weight (default bf16; the
    kernel is HBM-read-bound so this is ~2x on the memory roofline). Bias add and
    MXU accumulation stay f32. Pass None to keep the input dtype.
    """
    b, l, d = embed.shape
    h_in = math.isqrt(l)
    assert h_in * h_in == l, "sequence length must be a perfect square"
    gamma, beta, mean, var, w_cd = params
    c = w_cd.shape[0]

    # Fold BN (eval mode, running stats) into the conv weight/bias -- in f32.
    w_fold, bias = _fold_bn_into_conv(
        gamma.astype(jnp.float32), beta.astype(jnp.float32),
        mean.astype(jnp.float32), var.astype(jnp.float32),
        w_cd.astype(jnp.float32))

    x = embed if compute_dtype is None else embed.astype(compute_dtype)
    w = w_fold.astype(x.dtype)        # both matmul operands in the storage dtype
    bias = bias.astype(jnp.float32)   # bias add stays f32

    bytes_per = x.dtype.itemsize
    cost = pl.CostEstimate(
        flops=2 * b * l * d * c,
        transcendentals=0,
        bytes_accessed=(b * l * d * bytes_per + c * d * bytes_per + c * 4
                        + b * c * l * embed.dtype.itemsize))
    vmem_limit = 32 * 1024 * 1024     # safe on v5e/v6e/v7x (v7x physical = 64 MiB)

    m = b * l
    small = (m * d * bytes_per) <= (4 * 1024 * 1024)
    if small and tile_l is None:
        # --- Small-shape path: one grid step over the flattened (B*L, D) tokens.
        # No per-step overhead; output lane dim = B*L (128 in the test -> fully
        # dense stores instead of masked 64/128-lane vst.msk).
        x2 = x.reshape(m, d)
        out = pl.pallas_call(
            _fused_bn_conv1x1_kernel,
            out_shape=jax.ShapeDtypeStruct((c, m), embed.dtype),
            grid_spec=pltpu.PrefetchScalarGridSpec(
                num_scalar_prefetch=0,
                grid=(1,),
                in_specs=[
                    pl.BlockSpec((m, d), lambda i: (0, 0)),
                    pl.BlockSpec((c, d), lambda i: (0, 0)),
                    pl.BlockSpec((c, 1), lambda i: (0, 0)),
                ],
                out_specs=pl.BlockSpec((c, m), lambda i: (0, 0)),
            ),
            compiler_params=pltpu.CompilerParams(
                dimension_semantics=("arbitrary",),
                vmem_limit_bytes=vmem_limit),
            cost_estimate=cost,
        )(x2, w, bias)
        # (C, B*L) -> (C, B, h, w) -> (B, C, h, w): one tiny off-kernel transpose.
        out = out.reshape(c, b, h_in, h_in).transpose(1, 0, 2, 3)
    else:
        # --- Large-shape path: per-batch tiles along L, tile_l a multiple of 128.
        if tile_l is None:
            budget = 6 * 1024 * 1024   # per x buffer (pipeline double-buffers it)
            max_tile = max(128, (budget // (d * bytes_per)) // 128 * 128)
            tile_l = min(_round_up(l, 128), max_tile, 4096)
            if b == 1 and tile_l >= l and l > 128:
                # v7x has 2 TensorCores: keep >= 2 "parallel" grid steps when B==1.
                tile_l = max(128, _round_up(pl.cdiv(l, 2), 128))
        if tile_l >= l:
            tile_l = l                 # single full block along L (no ragged edge)
        # If tile_l does not divide L, the edge block is ragged; the op is per-row,
        # so garbage rows in the padded read only feed columns that the masked
        # edge store drops.
        grid = (b, pl.cdiv(l, tile_l))
        out = pl.pallas_call(
            _fused_bn_conv1x1_kernel,
            out_shape=jax.ShapeDtypeStruct((b, c, l), embed.dtype),
            grid_spec=pltpu.PrefetchScalarGridSpec(
                num_scalar_prefetch=0,
                grid=grid,
                in_specs=[
                    pl.BlockSpec((None, tile_l, d), lambda bi, i: (bi, i, 0)),
                    pl.BlockSpec((c, d), lambda bi, i: (0, 0)),   # resident weight
                    pl.BlockSpec((c, 1), lambda bi, i: (0, 0)),   # resident bias
                ],
                out_specs=pl.BlockSpec((None, c, tile_l), lambda bi, i: (bi, 0, i)),
            ),
            compiler_params=pltpu.CompilerParams(
                dimension_semantics=("parallel", "parallel"),
                vmem_limit_bytes=vmem_limit),
            cost_estimate=cost,
        )(x, w, bias)
        out = out.reshape(b, c, h_in, h_in)

    # Nearest upsample AFTER the projection (commutes with per-pixel eval-mode BN
    # + stride-1 1x1 conv).
    return _nearest_upsample_nchw(out, out_hw)


def make_params(key, d, c):
    """Deterministic synthetic parameters with the PyTorch module's shapes."""
    k1, k2, k3, k4, k5 = jax.random.split(key, 5)
    gamma = 1.0 + 0.1 * jax.random.normal(k1, (d,), jnp.float32)     # BN weight
    beta = 0.1 * jax.random.normal(k2, (d,), jnp.float32)            # BN bias
    mean = 0.1 * jax.random.normal(k3, (d,), jnp.float32)            # running_mean
    var = 0.5 + jnp.abs(jax.random.normal(k4, (d,), jnp.float32))    # running_var > 0
    # Conv2d(d, c, 1, bias=False).weight has shape (c, d, 1, 1); stored squeezed (c, d)
    w_cd = 0.05 * jax.random.normal(k5, (c, d), jnp.float32)
    return gamma, beta, mean, var, w_cd


def reference(embed, params, out_hw):
    """Pure-JAX reference following the exact PyTorch op order (upsample -> BN -> conv)."""
    b, l, d = embed.shape
    h_in = math.isqrt(l)
    gamma, beta, mean, var, w_cd = params
    x = embed.reshape(b, h_in, h_in, d)
    row_idx = (jnp.arange(out_hw) * h_in) // out_hw
    x = x[:, row_idx][:, :, row_idx]                        # upsample FIRST (B,H,W,D)
    xn = (x - mean) * (gamma / jnp.sqrt(var + BN_EPS)) + beta
    y = jnp.einsum("bhwd,cd->bchw", xn, w_cd)               # BN then 1x1 conv, NCHW out
    return y


if __name__ == "__main__":
    # in_shapes = (B, L, D) = (2, 64, 32); out_shapes = (B, C, H, W) = (2, 8, 16, 16)
    B, L, D = 2, 64, 32
    C, H = 8, 16

    key = jax.random.PRNGKey(0)
    k_emb, k_par = jax.random.split(key)
    embed = jax.random.normal(k_emb, (B, L, D), jnp.float32)
    params = make_params(k_par, D, C)

    ref = reference(embed, params, H)

    # f32 storage path: tight tolerance against the exact-op-order reference.
    out_f32 = jax.block_until_ready(
        vit2cnn_projector(embed, params, H, compute_dtype=None))
    assert out_f32.shape == (B, C, H, H), out_f32.shape
    assert jnp.allclose(out_f32, ref, atol=1e-4, rtol=1e-4), "f32 mismatch vs reference"

    # Default bf16-storage path (f32 accumulate): looser tolerance.
    out_bf16 = jax.block_until_ready(vit2cnn_projector(embed, params, H))
    assert out_bf16.shape == (B, C, H, H), out_bf16.shape
    assert jnp.allclose(out_bf16, ref, atol=5e-2, rtol=5e-2), "bf16 mismatch vs reference"

    print("KERNEL_OK")
</pallas_src>

<mosaic_0001>
module attributes {stable_mosaic.version = 11 : i64} {
  func.func @_fused_bn_conv1x1_kernel(%arg0: i32, %arg1: memref<128x32xf32, #tpu.memory_space<vmem>>, %arg2: memref<8x32xf32, #tpu.memory_space<vmem>>, %arg3: memref<8x1xf32, #tpu.memory_space<vmem>>, %arg4: memref<8x128xf32, #tpu.memory_space<vmem>>) attributes {dimension_semantics = [#tpu.dimension_semantics<arbitrary>], iteration_bounds = array<i64: 1>, scalar_prefetch = 0 : i64, scratch_operands = 0 : i64, tpu.core_type = #tpu.core_type<tc>, window_params = [{pipeline_mode = #tpu.pipeline_mode<synchronous>, transform_indices = @transform_0, window_bounds = array<i64: 128, 32>}, {pipeline_mode = #tpu.pipeline_mode<synchronous>, transform_indices = @transform_1, window_bounds = array<i64: 8, 32>}, {pipeline_mode = #tpu.pipeline_mode<synchronous>, transform_indices = @transform_2, window_bounds = array<i64: 8, 1>}, {pipeline_mode = #tpu.pipeline_mode<synchronous>, transform_indices = @transform_3, window_bounds = array<i64: 8, 128>}]} {
    %c0 = arith.constant 0 : index
    %c0_0 = arith.constant 0 : index
    %0 = vector.load %arg2[%c0, %c0_0] : memref<8x32xf32, #tpu.memory_space<vmem>>, vector<8x32xf32>
    %c0_1 = arith.constant 0 : index
    %c0_2 = arith.constant 0 : index
    %1 = vector.load %arg1[%c0_1, %c0_2] : memref<128x32xf32, #tpu.memory_space<vmem>>, vector<128x32xf32>
    %cst = arith.constant dense<0.000000e+00> : vector<8x128xf32>
    %2 = tpu.matmul %0, %1, %cst {dimension_numbers = #tpu.dot_dimension_numbers<[1], [1], [0], [0], [0, 0, 1, 0], [], []>} : vector<8x32xf32>, vector<128x32xf32>, vector<8x128xf32> -> vector<8x128xf32>
    %c0_3 = arith.constant 0 : index
    %c0_4 = arith.constant 0 : index
    %3 = vector.load %arg3[%c0_3, %c0_4] : memref<8x1xf32, #tpu.memory_space<vmem>>, vector<8x1xf32>
    %4 = vector.broadcast %3 : vector<8x1xf32> to vector<8x128xf32>
    %5 = arith.addf %2, %4 : vector<8x128xf32>
    %c0_5 = arith.constant 0 : index
    %c0_6 = arith.constant 0 : index
    %6 = vector.load %arg4[%c0_5, %c0_6] : memref<8x128xf32, #tpu.memory_space<vmem>>, vector<8x128xf32>
    tpu.vector_store %arg4[%c0_5, %c0_6], %5 {strides = array<i32>} : memref<8x128xf32, #tpu.memory_space<vmem>>, vector<8x128xf32>,
    return
  }
  func.func @transform_0(%arg0: i32) -> (i32, i32) {
    %c0_i32 = arith.constant 0 : i32
    %c0_i32_0 = arith.constant 0 : i32
    %c0_i32_1 = arith.constant 0 : i32
    return %c0_i32, %c0_i32_0 : i32, i32
  }
  func.func @transform_1(%arg0: i32) -> (i32, i32) {
    %c0_i32 = arith.constant 0 : i32
    %c0_i32_0 = arith.constant 0 : i32
    %c0_i32_1 = arith.constant 0 : i32
    return %c0_i32, %c0_i32_0 : i32, i32
  }
  func.func @transform_2(%arg0: i32) -> (i32, i32) {
    %c0_i32 = arith.constant 0 : i32
    %c0_i32_0 = arith.constant 0 : i32
    %c0_i32_1 = arith.constant 0 : i32
    return %c0_i32, %c0_i32_0 : i32, i32
  }
  func.func @transform_3(%arg0: i32) -> (i32, i32) {
    %c0_i32 = arith.constant 0 : i32
    %c0_i32_0 = arith.constant 0 : i32
    %c0_i32_1 = arith.constant 0 : i32
    return %c0_i32, %c0_i32_0 : i32, i32
  }
}

</mosaic_0001>

<bundles_post_ra>
// kernel: tpu_custom_call.1
= control target key start
LH: loop header
LB: loop body
LE: loop exit
PB: predicated region body
PF: predicated region fallthrough
CT: control target
= control target key end

     0   :  { %vm38_vm0 = vcmask 261120   ;;  %v306_v2 = vmov 0.0|0.0   ;;  %vm307_vm2 = vmmov 0   ;;  %v308_v5 = vmov 0.0   ;;  %s420_s0 = inlined_call_operand.vmem [shape: f32[128,32], index: 0, kind: input, shape index: {}]   ;;  %s421_s1 = inlined_call_operand.vmem [shape: f32[8,32], index: 1, kind: input, shape index: {}]   ;;  %s422_s2 = inlined_call_operand.vmem [shape: f32[8,1], index: 2, kind: input, shape index: {}]   ;;  %s423_s3 = inlined_call_operand.hbm [shape: f32[8,128], index: 3, kind: output, shape index: {}]  }
   0x1   :  { %v16_v0 = vld [vmem:[%s420_s0] sm:$0xff]  ;;  %v17_v1 = vld [vmem:[%s420_s0 + $0x8] sm:$0xff]  ;;  %244 = vmatprep.subr.bf16.mxu0 %v306_v2  ;;  %vm339_vm1 = vmpackc.low %vm38_vm0, %vm38_vm0  ;;  %241 = vmatprep.mubr.msk.f32.mxu0 %vm307_vm2, %v308_v5  ;;  %v309_v6 = vmov 0  }
   0x2   :  { %v245_v3 = vpack.c.bf16 %v17_v1, %v16_v0  ;;  %281 = vset.pattern.permute.xlu0 %v309_v6  ;;  %v18_v7 = vld [vmem:[%s420_s0 + $0x10] sm:$0xff]  ;;  %v19_v8 = vld [vmem:[%s420_s0 + $0x18] sm:$0xff]  ;;  %v32_v9 = vld [vmem:[%s422_s2] sm:$0xff] }
   0x4   :  { %247 = vmatpush3.bf16.xpose.msk.msra.mxu0 %vm339_vm1, %v245_v3 }
   0x5   :  { %248 = vmatprep.subr.bf16.mxu0 %v306_v2 }
   0x6   :  { %8 = vsyncpa [#allocation3], 0  ;;  %v249_v10 = vpack.c.bf16 %v19_v8, %v18_v7  ;;  %35 = vperm.xlu0 %281, %v32_v9   ;;  %v20_v11 = vld [vmem:[%s420_s0 + $0x20] sm:$0xff]  ;;  %v21_v12 = vld [vmem:[%s420_s0 + $0x28] sm:$0xff]  ;;  %s310_s20 = smov [#allocation2]  }
   0x7   :  { %v253_v13 = vpack.c.bf16 %v21_v12, %v20_v11  ;;  %v22_v14 = vld [vmem:[%s420_s0 + $0x30] sm:$0xff]  ;;  %v23_v15 = vld [vmem:[%s420_s0 + $0x38] sm:$0xff]  ;;  %v24_v17 = vld [vmem:[%s420_s0 + $0x40] sm:$0xff]  ;;  %s167_s21 = sshll.u32 %s310_s20, 4  ;;  %s168_s21 = int_to_ptr.vmem [resolvable:$true] %s167_s21 }
   0x8   :  { %v257_v16 = vpack.c.bf16 %v23_v15, %v22_v14  ;;  %v25_v18 = vld [vmem:[%s420_s0 + $0x48] sm:$0xff]  ;;  %v26_v20 = vld [vmem:[%s420_s0 + $0x50] sm:$0xff]  ;;  %v27_v21 = vld [vmem:[%s420_s0 + $0x58] sm:$0xff]  ;;  %s282_s22 = scalar_lea.vmem %s168_s21, 128  ;;  %p287_p1 = scmp.lt.s32.totalorder %s168_s21, %s168_s21 }
   0x9   :  { %v261_v19 = vpack.c.bf16 %v25_v18, %v24_v17  ;;  %v265_v22 = vpack.c.bf16 %v27_v21, %v26_v20  ;;  %v28_v23 = vld [vmem:[%s420_s0 + $0x60] sm:$0xff]  ;;  %v29_v24 = vld [vmem:[%s420_s0 + $0x68] sm:$0xff]  ;;  %v30_v26 = vld [vmem:[%s420_s0 + $0x70] sm:$0xff]  ;;  %p283_p0 = scmp.ne.s32.totalorder %s168_s21, %s282_s22  ;;  %p288_p2 = scmp.lt.s32.totalorder %s282_s22, %s282_s22 }
   0xa   :  { %v269_v25 = vpack.c.bf16 %v29_v24, %v28_v23  ;;  %v31_v27 = vld [vmem:[%s420_s0 + $0x78] sm:$0xff]  ;;  %v15_v29 = vld [vmem:[%s421_s1] sm:$0xff] }
   0xb   :  { %v273_v28 = vpack.c.bf16 %v31_v27, %v30_v26  ;;  %p289_p3 = por %p288_p2, %p287_p1 }
   0xc   :  { %251 = vmatpush3.bf16.xpose.msk.msra.mxu0 %vm339_vm1, %v249_v10 }
   0xd   :  { %252 = vmatprep.subr.bf16.mxu0 %v306_v2  ;;  %p290_p4 = pnand %p289_p3, %p283_p0 }
  0x14   :  { %255 = vmatpush3.bf16.xpose.msk.msra.mxu0 %vm339_vm1, %v253_v13 }
  0x15   :  { %256 = vmatprep.subr.bf16.mxu0 %v306_v2 }
  0x1c   :  { %259 = vmatpush3.bf16.xpose.msk.msra.mxu0 %vm339_vm1, %v257_v16 }
  0x1d   :  { %260 = vmatprep.subr.bf16.mxu0 %v306_v2 }
  0x24   :  { %263 = vmatpush3.bf16.xpose.msk.msra.mxu0 %vm339_vm1, %v261_v19 }
  0x25   :  { %264 = vmatprep.subr.bf16.mxu0 %v306_v2 }
  0x2c   :  { %267 = vmatpush3.bf16.xpose.msk.msra.mxu0 %vm339_vm1, %v265_v22 }
  0x2d   :  { %268 = vmatprep.subr.bf16.mxu0 %v306_v2 }
  0x34   :  { %271 = vmatpush3.bf16.xpose.msk.msra.mxu0 %vm339_vm1, %v269_v25 }
  0x35   :  { %272 = vmatprep.subr.bf16.mxu0 %v306_v2 }
  0x3c   :  { %275 = vmatpush3.bf16.xpose.msk.msra.mxu0 %vm339_vm1, %v273_v28 }
  0x43   :  { %242 = vmatmul.mubr.msk.f32.vlgmr.msra.gmra.mrb[0].mxu0 %vm38_vm0, %v15_v29 }
  0x85   :  { %v36_v30 = vpop.permute.xlu0 %35 }
 0x116   :  { %v156_v31 = vpop.f32.mrb[0].mxu0 }
 0x117   :  { %v157_v32 = vadd.f32 %v156_v31, %v36_v30  ;;  %v243_v33 = vpop.f32.mrb[1].mxu0 }
 0x119   :  { %160 = vst [vmem:[#allocation2] sm:$0xff] %v157_v32 }
 0x11a   :  { %293 = shalt.err (!%p290_p4)
}
 0x11b   :  { %s294_s1 = scalar_lea.hbm %s423_s3, 128 }
 0x11c   :  { %p295_p5 = scmp.ne.s32.totalorder %s423_s3, %s294_s1  ;;  %p298_p6 = scmp.lt.u32.totalorder %s294_s1, %s423_s3 }
 0x11e   :  { %p300_p7 = pnand %p298_p6, %p295_p5 }
 0x120   :  { %303 = shalt.err (!%p300_p7)
}
 0x121   :  { %170 = dma.vmem_to_hbm [thread:$0]  %s168_s21, 128, %s423_s3, [#allocation3]  }
 0x122   :  { %304 = dma.done.wait [#allocation3], 128  }
 0x123   :  { %305 = vsyncadd [#allocation3], 4294967168 }
 0x124   :  { %174 = vsyncpa [#allocation3], 1 }

</bundles_post_ra>
